<compile_context>
chip_gen: v7x
topology: tpu7x:2x2x1
jax: 0.10.0
libtpu: 0.0.40
codegen_flags: <defaults>
</compile_context>

<pallas_src>
import math

import jax
import jax.numpy as jnp
from jax.experimental import pallas as pl
from jax.experimental.pallas import tpu as pltpu


def get_sub_tensor_static(x_list, idx: int):
    """Static-index fast path on a Python list: pure selection, no kernel."""
    return x_list[idx]


def get_sub_tensor(x_stacked, idx):
    """GetSubTensor forward: a copy of x_stacked[idx].

    x_stacked: already-stacked [N, B, C, H, W] buffer (the TListIM's storage).
    idx:       Python int (static fast path) or device/traced scalar
               (dynamic Pallas HBM->HBM DMA path).
    """
    N = x_stacked.shape[0]
    slab_shape = x_stacked.shape[1:]
    total = math.prod(slab_shape)
    dtype = x_stacked.dtype
    itemsize = jnp.dtype(dtype).itemsize

    # Static-index fast path: the cheapest copy is no copy.
    if isinstance(idx, int):
        return x_stacked[idx]

    # Lane-dense 2D view of the slab (last dim a multiple of 128) so each DMA
    # moves dense, aligned rows.
    lane = next((c for c in (2048, 1024, 512, 256, 128) if total % c == 0), None)
    if lane is None:
        # TODO(synk): ragged slab sizes (not a multiple of 128) — fall back to
        # XLA's contiguous dynamic slice, which is already bandwidth-optimal.
        return jax.lax.dynamic_index_in_dim(x_stacked, idx, axis=0, keepdims=False)

    rows = total // lane
    # Metadata-only reshape as long as the caller's stacked buffer is contiguous.
    x3d = x_stacked.reshape(N, rows, lane)

    # Split the slab into up to 8 statically-bounded chunks so several DMAs are
    # in flight simultaneously (pure copy: DMA-queue concurrency is the only
    # lever).  Chunk rows rounded to the dtype-correct sublane multiple.
    sub = max(1, 32 // itemsize)          # 8 for f32, 16 for bf16, 32 for int8
    n_target = max(1, min(8, rows))
    chunk_rows = pl.cdiv(rows, n_target)
    chunk_rows = ((chunk_rows + sub - 1) // sub) * sub
    chunk_rows = max(1, min(chunk_rows, rows))
    n_chunks = pl.cdiv(rows, chunk_rows)

    def dma_kernel(idx_ref, x_hbm, o_hbm, sems):
        i = idx_ref[0]

        def chunk_copy(c):
            start = c * chunk_rows
            size = min(chunk_rows, rows - start)
            return pltpu.make_async_copy(
                x_hbm.at[i, pl.ds(start, size), :],
                o_hbm.at[pl.ds(start, size), :],
                sems.at[c],
            )

        # Issue all HBM->HBM chunk copies, then wait for all of them.
        for c in range(n_chunks):
            chunk_copy(c).start()
        for c in range(n_chunks):
            chunk_copy(c).wait()

    # Clamp the dynamic index so an out-of-range idx can't drive an OOB DMA.
    idx_arr = jnp.clip(jnp.asarray(idx, dtype=jnp.int32), 0, N - 1).reshape((1,))

    out2d = pl.pallas_call(
        dma_kernel,
        out_shape=jax.ShapeDtypeStruct((rows, lane), dtype),
        grid_spec=pltpu.PrefetchScalarGridSpec(
            num_scalar_prefetch=1,
            grid=(1,),
            in_specs=[pl.BlockSpec(memory_space=pl.ANY)],   # raw HBM ref, no auto-DMA
            out_specs=pl.BlockSpec(memory_space=pl.ANY),    # raw HBM ref, no VMEM bounce
            scratch_shapes=[pltpu.SemaphoreType.DMA((n_chunks,))],
        ),
        # Advisory hint: this custom call is pure memory traffic.
        cost_estimate=pl.CostEstimate(
            flops=0, transcendentals=0, bytes_accessed=2 * total * itemsize),
    )(idx_arr, x3d)

    return out2d.reshape(slab_shape)


if __name__ == "__main__":
    key = jax.random.PRNGKey(0)
    # "List of image tensors" (N images), each NCHW [B=2, C=4, H=16, W=16].
    # The caller holds a single stacked buffer; the list elements are views.
    N, B, C, H, W = 3, 2, 4, 16, 16
    x_stacked = jax.random.normal(key, (N, B, C, H, W), dtype=jnp.float32)
    x_list = [x_stacked[i] for i in range(N)]

    idx = 1  # GetSubTensor(idx=1)

    # Dynamic-index Pallas path (device scalar index -> HBM->HBM DMA kernel).
    out = get_sub_tensor(x_stacked, jnp.asarray(idx, dtype=jnp.int32))
    out = jax.block_until_ready(out)

    # Reference: what the PyTorch forward does (plain selection).
    ref = x_list[idx]
    assert out.shape == ref.shape and out.dtype == ref.dtype
    assert jnp.array_equal(out, ref), "kernel output mismatch"

    # Static-index fast path (no kernel) must also match.
    assert jnp.array_equal(get_sub_tensor(x_stacked, idx), ref)
    assert jnp.array_equal(get_sub_tensor_static(x_list, idx), ref)

    print("KERNEL_OK")
</pallas_src>

<mosaic_0001>
module attributes {stable_mosaic.version = 11 : i64} {
  func.func @dma_kernel(%arg0: i32, %arg1: memref<1xi32, #tpu.memory_space<smem>>, %arg2: memref<3x1x2048xf32, #tpu.memory_space<any>>, %arg3: memref<1x2048xf32, #tpu.memory_space<any>>, %arg4: memref<1x!tpu.dma_semaphore, #tpu.memory_space<semaphore_mem>>) attributes {dimension_semantics = [#tpu.dimension_semantics<arbitrary>], iteration_bounds = array<i64: 1>, scalar_prefetch = 1 : i64, scratch_operands = 1 : i64, tpu.core_type = #tpu.core_type<tc>, window_params = [{}, {}]} {
    %c0 = arith.constant 0 : index
    %0 = memref.load %arg1[%c0] : memref<1xi32, #tpu.memory_space<smem>>
    %c0_i32 = arith.constant 0 : i32
    %c0_i32_0 = arith.constant 0 : i32
    %c0_i32_1 = arith.constant 0 : i32
    %1 = tpu.memref_slice %arg2[%0, %c0_i32_0, %c0_i32_1] : memref<3x1x2048xf32, #tpu.memory_space<any>> -> memref<1x1x2048xf32, #tpu.memory_space<any>>
    %2 = tpu.memref_squeeze %1 : memref<1x1x2048xf32, #tpu.memory_space<any>> -> memref<1x2048xf32, #tpu.memory_space<any>>
    %c0_i32_2 = arith.constant 0 : i32
    %c0_i32_3 = arith.constant 0 : i32
    %3 = tpu.memref_slice %arg3[%c0_i32_2, %c0_i32_3] : memref<1x2048xf32, #tpu.memory_space<any>> -> memref<1x2048xf32, #tpu.memory_space<any>>
    %4 = tpu.memref_slice %arg4[%c0_i32] : memref<1x!tpu.dma_semaphore, #tpu.memory_space<semaphore_mem>> -> memref<1x!tpu.dma_semaphore, #tpu.memory_space<semaphore_mem>>
    %5 = tpu.memref_squeeze %4 : memref<1x!tpu.dma_semaphore, #tpu.memory_space<semaphore_mem>> -> memref<!tpu.dma_semaphore, #tpu.memory_space<semaphore_mem>>
    tpu.enqueue_dma source(%2 : memref<1x2048xf32, #tpu.memory_space<any>>) target(%3 : memref<1x2048xf32, #tpu.memory_space<any>>) target_semaphore(%5 : memref<!tpu.dma_semaphore, #tpu.memory_space<semaphore_mem>>)
    %c0_i32_4 = arith.constant 0 : i32
    %c0_i32_5 = arith.constant 0 : i32
    %c0_i32_6 = arith.constant 0 : i32
    %6 = tpu.memref_slice %arg2[%0, %c0_i32_5, %c0_i32_6] : memref<3x1x2048xf32, #tpu.memory_space<any>> -> memref<1x1x2048xf32, #tpu.memory_space<any>>
    %7 = tpu.memref_squeeze %6 : memref<1x1x2048xf32, #tpu.memory_space<any>> -> memref<1x2048xf32, #tpu.memory_space<any>>
    %c0_i32_7 = arith.constant 0 : i32
    %c0_i32_8 = arith.constant 0 : i32
    %8 = tpu.memref_slice %arg3[%c0_i32_7, %c0_i32_8] : memref<1x2048xf32, #tpu.memory_space<any>> -> memref<1x2048xf32, #tpu.memory_space<any>>
    %9 = tpu.memref_slice %arg4[%c0_i32_4] : memref<1x!tpu.dma_semaphore, #tpu.memory_space<semaphore_mem>> -> memref<1x!tpu.dma_semaphore, #tpu.memory_space<semaphore_mem>>
    %10 = tpu.memref_squeeze %9 : memref<1x!tpu.dma_semaphore, #tpu.memory_space<semaphore_mem>> -> memref<!tpu.dma_semaphore, #tpu.memory_space<semaphore_mem>>
    tpu.wait_dma2 semaphore(%10 : memref<!tpu.dma_semaphore, #tpu.memory_space<semaphore_mem>>) src(%7 : memref<1x2048xf32, #tpu.memory_space<any>>) dst(%8 : memref<1x2048xf32, #tpu.memory_space<any>>)
    return
  }
}

</mosaic_0001>

<bundles_post_ra>
// kernel: tpu_custom_call.1
= control target key start
LH: loop header
LB: loop body
LE: loop exit
PB: predicated region body
PF: predicated region fallthrough
CT: control target
= control target key end

     0   :  { %s45_s15 = smov [#allocation2]   ;;  %s46_s16 = smov [#allocation5]   ;;  %s72_s0 = inlined_call_operand.<no memory space> [shape: s32[1], index: 0, kind: input, shape index: {}]   ;;  %s73_s1 = inlined_call_operand.hbm [shape: f32[3,1,2048], index: 1, kind: input, shape index: {}]   ;;  %s74_s2 = inlined_call_operand.hbm [shape: f32[1,2048], index: 2, kind: output, shape index: {}]  }
   0x1   :  { %s39_s11 = sshll.u32 %s72_s0, 8  ;;  %s47_s17 = smov 0  }
   0x2   :  { %s11_s14 = scalar_lea.hbm %s73_s1, %s39_s11 }
   0x3   :  { %24 = dma.general %s11_s14, 256, %s74_s2, %s45_s15, %s46_s16, [#allocation6], %s47_s17, 0  }
   0x4   :  { %43 = dma.done.wait [#allocation2], 256 }
   0x5   :  { %44 = vsyncadd [#allocation2], 4294967040 }
   0x6   :  { %28 = vsyncmov [#allocation2] }
   0x9   :  { %s29_s20 = vpop.sfrf %28 }
   0xa   :  { %p38_p0 = scmp.ne.s32.totalorder %s29_s20, 0 }
   0xc   :  { %33 = shalt.err (%p38_p0)  }

</bundles_post_ra>
